<compile_context>
chip_gen: v5e
topology: v5e:2x2
jax: 0.10.0
libtpu: 0.0.40
codegen_flags: <defaults>
</compile_context>

<pallas_src>
import functools

import jax
import jax.numpy as jnp
from jax.experimental import pallas as pl
from jax.experimental.pallas import tpu as pltpu

NUM_CLASSES = 50
CLS_PAD = 128        # lane-dense padded class dimension
FEAT_DIM = 1280      # EfficientNet-B0 feature width (folded away in-kernel)
HID_DIM = 512


def _round_up(x, m):
    return ((x + m - 1) // m) * m


def _device_kind():
    try:
        return jax.devices()[0].device_kind.lower()
    except Exception:
        return ""


def _pick_tile_and_vmem(B, C, HW):
    """Per-generation batch tile TB and explicit VMEM limit."""
    kind = _device_kind()
    # f32 x block bytes per sample, accounting for (8,128) in-tile padding.
    x_row_bytes = _round_up(C, 8) * _round_up(HW, 128) * 4

    if "v5" in kind:
        tb_cap, x_budget, vmem_cap = 128, 48 << 20, 100 << 20   # 4x128 MXU
    elif "v7" in kind:
        tb_cap, x_budget, vmem_cap = 256, 20 << 20, 56 << 20    # 64 MiB physical
    else:  # v6e / unknown default
        tb_cap, x_budget, vmem_cap = 256, 48 << 20, 100 << 20

    # Biggest TB (multiple of 8) whose double-buffered x block fits the budget.
    tb = min(tb_cap, max(8, (x_budget // (2 * x_row_bytes)) // 8 * 8))
    tb = min(tb, _round_up(B, 8))
    if "v7" in kind:
        # Keep grid length >= 2 so both v7x TensorCores get work.
        tb = min(tb, max(8, _round_up(pl.cdiv(B, 2), 8)))

    # Explicit VMEM limit: 2x x block + double-buffered (tiny) weights + out.
    w_bytes = (C * HID_DIM * 2 + HID_DIM * 4 + HID_DIM * CLS_PAD * 2 + CLS_PAD * 4)
    needed = 2 * tb * x_row_bytes + 2 * w_bytes + 2 * tb * CLS_PAD * 4 + (4 << 20)
    vmem_limit = int(min(vmem_cap, max(needed, 32 << 20)))
    return tb, vmem_limit


# ---------------------------------------------------------------------------
# Fused kernel: avg-pool (f32) -> folded head+Linear(C, 512) -> ReLU
#               -> [Dropout=id] -> Linear(512, CLS_PAD)
# ---------------------------------------------------------------------------
def _fused_kernel(x_ref, wf_ref, bf_ref, w2_ref, b2_ref, o_ref, *, inv_hw):
    # x_ref: (TB, C, HW) f32 — channels on sublanes, spatial on lanes.
    # Lane-axis reduce on the XLU; no full-block upcast/copy.
    xm = jnp.sum(x_ref[...], axis=-1, dtype=jnp.float32) * inv_hw        # (TB, C) f32

    # Folded conv_head + Linear(1280, 512): (TB, C) @ (C, 512) + b_fold.
    h = jnp.dot(xm.astype(jnp.bfloat16), wf_ref[...],
                preferred_element_type=jnp.float32) + bf_ref[...]        # (TB, 512) f32
    h = jnp.maximum(h, 0.0)                                              # ReLU

    # Linear(512, CLS_PAD)  (Dropout == identity in eval mode).
    o_ref[...] = jnp.dot(h.astype(jnp.bfloat16), w2_ref[...],
                         preferred_element_type=jnp.float32) + b2_ref[...]


def bird_classifier_forward(x_nchw, params):
    """x_nchw: (B, C, H, W) float32 -> logits (B, NUM_CLASSES) float32."""
    B, C, H, W = x_nchw.shape
    HW = H * W

    TB, vmem_limit = _pick_tile_and_vmem(B, C, HW)
    Bp = _round_up(B, TB)

    # NCHW -> (B, C, HW): spatial on the lane axis, no transpose, no dtype cast.
    x = x_nchw.reshape(B, C, HW)
    if Bp != B:
        # No-op whenever B % TB == 0 (typical large-batch inference).
        x = jnp.pad(x, ((0, Bp - B), (0, 0), (0, 0)))

    # Fold conv_head into the first classifier layer (both purely linear):
    #   feats @ W1 == (xm @ Wh + bh) @ W1 == xm @ (Wh @ W1) + (bh @ W1)
    w_fold = params["w_head"] @ params["w1"]                              # (C, 512) f32
    b_fold = params["b_head"] @ params["w1"] + params["b1"]               # (1, 512) f32
    wf = w_fold.astype(jnp.bfloat16)
    bf = b_fold                                                           # f32
    w2 = jnp.pad(params["w2"], ((0, 0), (0, CLS_PAD - NUM_CLASSES))
                 ).astype(jnp.bfloat16)                                   # (512, 128)
    b2 = jnp.pad(params["b2"], ((0, 0), (0, CLS_PAD - NUM_CLASSES)))      # (1, 128) f32

    kernel = functools.partial(_fused_kernel, inv_hw=float(1.0 / HW))

    logits_pad = pl.pallas_call(
        kernel,
        out_shape=jax.ShapeDtypeStruct((Bp, CLS_PAD), jnp.float32),
        grid_spec=pltpu.PrefetchScalarGridSpec(
            num_scalar_prefetch=0,
            grid=(Bp // TB,),
            in_specs=[
                pl.BlockSpec((TB, C, HW), lambda b: (b, 0, 0)),
                pl.BlockSpec((C, HID_DIM), lambda b: (0, 0)),
                pl.BlockSpec((1, HID_DIM), lambda b: (0, 0)),
                pl.BlockSpec((HID_DIM, CLS_PAD), lambda b: (0, 0)),
                pl.BlockSpec((1, CLS_PAD), lambda b: (0, 0)),
            ],
            out_specs=pl.BlockSpec((TB, CLS_PAD), lambda b: (b, 0)),
        ),
        compiler_params=pltpu.CompilerParams(
            dimension_semantics=("parallel",),
            vmem_limit_bytes=vmem_limit,
        ),
    )(x, wf, bf, w2, b2)

    return logits_pad[:B, :NUM_CLASSES]


def init_params(key, c_in):
    k0, k1, k2 = jax.random.split(key, 3)
    scale_head = 1.0 / jnp.sqrt(jnp.float32(c_in))
    scale1 = 1.0 / jnp.sqrt(jnp.float32(FEAT_DIM))
    scale2 = 1.0 / jnp.sqrt(jnp.float32(HID_DIM))
    return {
        "w_head": jax.random.normal(k0, (c_in, FEAT_DIM), jnp.float32) * scale_head,
        "b_head": jnp.zeros((1, FEAT_DIM), jnp.float32),
        "w1": jax.random.normal(k1, (FEAT_DIM, HID_DIM), jnp.float32) * scale1,
        "b1": jnp.zeros((1, HID_DIM), jnp.float32),
        "w2": jax.random.normal(k2, (HID_DIM, NUM_CLASSES), jnp.float32) * scale2,
        "b2": jnp.zeros((1, NUM_CLASSES), jnp.float32),
    }


if __name__ == "__main__":
    key = jax.random.PRNGKey(0)
    kx, kp = jax.random.split(key)

    # Small, module-consistent shapes: batch=2, channels=4, spatial=16x16.
    B, C, H, W = 2, 4, 16, 16
    x = jax.random.normal(kx, (B, C, H, W), jnp.float32)
    params = init_params(kp, C)

    logits = bird_classifier_forward(x, params)
    logits = jax.block_until_ready(logits)

    assert logits.shape == (B, NUM_CLASSES)
    assert logits.dtype == jnp.float32
    assert bool(jnp.all(jnp.isfinite(logits)))
    print("KERNEL_OK")
</pallas_src>

<mosaic_0001>
module attributes {stable_mosaic.version = 11 : i64} {
  func.func @_fused_kernel(%arg0: i32, %arg1: memref<8x4x256xf32, #tpu.memory_space<vmem>>, %arg2: memref<4x512xbf16, #tpu.memory_space<vmem>>, %arg3: memref<1x512xf32, #tpu.memory_space<vmem>>, %arg4: memref<512x128xbf16, #tpu.memory_space<vmem>>, %arg5: memref<1x128xf32, #tpu.memory_space<vmem>>, %arg6: memref<8x128xf32, #tpu.memory_space<vmem>>) attributes {dimension_semantics = [#tpu.dimension_semantics<parallel>], iteration_bounds = array<i64: 1>, scalar_prefetch = 0 : i64, scratch_operands = 0 : i64, tpu.core_type = #tpu.core_type<tc>, window_params = [{transform_indices = @transform_0, window_bounds = array<i64: 8, 4, 256>}, {pipeline_mode = #tpu.pipeline_mode<synchronous>, transform_indices = @transform_1, window_bounds = array<i64: 4, 512>}, {pipeline_mode = #tpu.pipeline_mode<synchronous>, transform_indices = @transform_2, window_bounds = array<i64: 1, 512>}, {pipeline_mode = #tpu.pipeline_mode<synchronous>, transform_indices = @transform_3, window_bounds = array<i64: 512, 128>}, {pipeline_mode = #tpu.pipeline_mode<synchronous>, transform_indices = @transform_4, window_bounds = array<i64: 1, 128>}, {transform_indices = @transform_5, window_bounds = array<i64: 8, 128>}]} {
    %c0 = arith.constant 0 : index
    %c0_0 = arith.constant 0 : index
    %c0_1 = arith.constant 0 : index
    %0 = vector.load %arg1[%c0, %c0_0, %c0_1] : memref<8x4x256xf32, #tpu.memory_space<vmem>>, vector<8x4x256xf32>
    %cst = arith.constant dense<0.000000e+00> : vector<8x4xf32>
    %1 = vector.multi_reduction <add>, %0, %cst [2] : vector<8x4x256xf32> to vector<8x4xf32>
    %cst_2 = arith.constant 3.906250e-03 : f32
    %2 = vector.broadcast %cst_2 : f32 to vector<8x4xf32>
    %3 = arith.mulf %1, %2 : vector<8x4xf32>
    %4 = arith.truncf %3 : vector<8x4xf32> to vector<8x4xbf16>
    %c0_3 = arith.constant 0 : index
    %c0_4 = arith.constant 0 : index
    %5 = vector.load %arg2[%c0_3, %c0_4] : memref<4x512xbf16, #tpu.memory_space<vmem>>, vector<4x512xbf16>
    %cst_5 = arith.constant dense<0.000000e+00> : vector<8x512xf32>
    %6 = tpu.matmul %4, %5, %cst_5 {dimension_numbers = #tpu.dot_dimension_numbers<[1], [0], [0], [1], [0, 0, 1, 1], [], []>} : vector<8x4xbf16>, vector<4x512xbf16>, vector<8x512xf32> -> vector<8x512xf32>
    %c0_6 = arith.constant 0 : index
    %c0_7 = arith.constant 0 : index
    %7 = vector.load %arg3[%c0_6, %c0_7] : memref<1x512xf32, #tpu.memory_space<vmem>>, vector<1x512xf32>
    %8 = vector.broadcast %7 : vector<1x512xf32> to vector<8x512xf32>
    %9 = arith.addf %6, %8 : vector<8x512xf32>
    %cst_8 = arith.constant 0.000000e+00 : f32
    %10 = vector.broadcast %cst_8 : f32 to vector<8x512xf32>
    %11 = arith.maximumf %9, %10 : vector<8x512xf32>
    %12 = arith.truncf %11 : vector<8x512xf32> to vector<8x512xbf16>
    %c0_9 = arith.constant 0 : index
    %c0_10 = arith.constant 0 : index
    %13 = vector.load %arg4[%c0_9, %c0_10] : memref<512x128xbf16, #tpu.memory_space<vmem>>, vector<512x128xbf16>
    %cst_11 = arith.constant dense<0.000000e+00> : vector<8x128xf32>
    %14 = tpu.matmul %12, %13, %cst_11 {dimension_numbers = #tpu.dot_dimension_numbers<[1], [0], [0], [1], [0, 0, 1, 1], [], []>} : vector<8x512xbf16>, vector<512x128xbf16>, vector<8x128xf32> -> vector<8x128xf32>
    %c0_12 = arith.constant 0 : index
    %c0_13 = arith.constant 0 : index
    %15 = vector.load %arg5[%c0_12, %c0_13] : memref<1x128xf32, #tpu.memory_space<vmem>>, vector<1x128xf32>
    %16 = vector.broadcast %15 : vector<1x128xf32> to vector<8x128xf32>
    %17 = arith.addf %14, %16 : vector<8x128xf32>
    %c0_14 = arith.constant 0 : index
    %c0_15 = arith.constant 0 : index
    %18 = vector.load %arg6[%c0_14, %c0_15] : memref<8x128xf32, #tpu.memory_space<vmem>>, vector<8x128xf32>
    tpu.vector_store %arg6[%c0_14, %c0_15], %17 {strides = array<i32>} : memref<8x128xf32, #tpu.memory_space<vmem>>, vector<8x128xf32>,
    return
  }
  func.func @transform_0(%arg0: i32) -> (i32, i32, i32) {
    %c0_i32 = arith.constant 0 : i32
    %c0_i32_0 = arith.constant 0 : i32
    %c0_i32_1 = arith.constant 0 : i32
    return %arg0, %c0_i32, %c0_i32_0 : i32, i32, i32
  }
  func.func @transform_1(%arg0: i32) -> (i32, i32) {
    %c0_i32 = arith.constant 0 : i32
    %c0_i32_0 = arith.constant 0 : i32
    %c0_i32_1 = arith.constant 0 : i32
    return %c0_i32, %c0_i32_0 : i32, i32
  }
  func.func @transform_2(%arg0: i32) -> (i32, i32) {
    %c0_i32 = arith.constant 0 : i32
    %c0_i32_0 = arith.constant 0 : i32
    %c0_i32_1 = arith.constant 0 : i32
    return %c0_i32, %c0_i32_0 : i32, i32
  }
  func.func @transform_3(%arg0: i32) -> (i32, i32) {
    %c0_i32 = arith.constant 0 : i32
    %c0_i32_0 = arith.constant 0 : i32
    %c0_i32_1 = arith.constant 0 : i32
    return %c0_i32, %c0_i32_0 : i32, i32
  }
  func.func @transform_4(%arg0: i32) -> (i32, i32) {
    %c0_i32 = arith.constant 0 : i32
    %c0_i32_0 = arith.constant 0 : i32
    %c0_i32_1 = arith.constant 0 : i32
    return %c0_i32, %c0_i32_0 : i32, i32
  }
  func.func @transform_5(%arg0: i32) -> (i32, i32) {
    %c0_i32 = arith.constant 0 : i32
    %c0_i32_0 = arith.constant 0 : i32
    return %arg0, %c0_i32 : i32, i32
  }
}

</mosaic_0001>

<bundles_post_ra>
// kernel: tpu_custom_call.1
= control target key start
LH: loop header
LB: loop body
LE: loop exit
PB: predicated region body
PF: predicated region fallthrough
CT: control target
= control target key end

     0   :  { %10 = vsyncpa [#allocation3], 0  ;;  %s1035_s0 = inlined_call_operand.hbm [shape: f32[8,4,256], index: 0, kind: input, shape index: {}]   ;;  %s1036_s1 = inlined_call_operand.hbm [shape: bf16[4,512], index: 1, kind: input, shape index: {}]   ;;  %s1037_s2 = inlined_call_operand.hbm [shape: f32[1,512], index: 2, kind: input, shape index: {}]   ;;  %s1038_s3 = inlined_call_operand.hbm [shape: bf16[512,128], index: 3, kind: input, shape index: {}]   ;;  %s1039_s4 = inlined_call_operand.vmem [shape: f32[1,128], index: 4, kind: input, shape index: {}]   ;;  %s1040_s5 = inlined_call_operand.hbm [shape: f32[8,128], index: 5, kind: output, shape index: {}]  }
   0x1   :  { %11 = vsyncpa [#allocation6], 0 }
   0x2   :  { %12 = vsyncpa [#allocation9], 0  ;;  %s32_s20 = sshll.u32 %s1036_s1, 4  ;;  %s33_s20 = int_to_ptr.hbm [resolvable:$true] %s32_s20 }
   0x3   :  { %13 = vsyncpa [#allocation4], 0  ;;  %s962_s21 = smov [#allocation5]   ;;  %s18_s25 = sshll.u32 %s1035_s0, 4  ;;  %s19_s25 = int_to_ptr.hbm [resolvable:$true] %s18_s25 }
   0x4   :  { %s34_s22 = sshll.u32 %s962_s21, 4  ;;  %s963_s26 = smov [#allocation2]   ;;  %s35_s22 = int_to_ptr.vmem [resolvable:$true] %s34_s22 }
   0x5   :  { %37 = dma.hbm_to_vmem [thread:$0]  %s33_s20, 128, %s35_s22, [#allocation6]  }
   0x6   :  { %s20_s27 = sshll.u32 %s963_s26, 4  ;;  %s964_s28 = smov 128   ;;  %s21_s27 = int_to_ptr.vmem [resolvable:$true] %s20_s27 }
   0x7   :  { %s965_s29 = smov 8   ;;  %s43_s1 = sshll.u32 %s1037_s2, 4  ;;  %s44_s1 = int_to_ptr.hbm [resolvable:$true] %s43_s1 }
   0x8   :  { %26 = dma.hbm_to_vmem [thread:$0]  %s19_s25, 1024, %s21_s27, [#allocation3], %s964_s28, %s964_s28, %s965_s29  }
   0x9   :  { %s966_s7 = smov [#allocation7]   ;;  %s53_s0 = sshll.u32 %s1038_s3, 4  ;;  %s54_s0 = int_to_ptr.hbm [resolvable:$true] %s53_s0 }
   0xa   :  { %s45_s8 = sshll.u32 %s966_s7, 4  ;;  %s967_s11 = smov [#allocation8]   ;;  %s46_s8 = int_to_ptr.vmem [resolvable:$true] %s45_s8 }
   0xb   :  { %48 = dma.hbm_to_vmem [thread:$0]  %s44_s1, 64, %s46_s8, [#allocation6]  }
   0xc   :  { %s55_s12 = sshll.u32 %s967_s11, 4  ;;  %s968_s13 = smov 64   ;;  %s56_s12 = int_to_ptr.vmem [resolvable:$true] %s55_s12 }
   0xd   :  { %s969_s14 = smov 4  }
   0xe   :  { %61 = dma.hbm_to_vmem [thread:$0]  %s54_s0, 4096, %s56_s12, [#allocation9], %s968_s13, %s968_s13, %s969_s14  }
   0xf   :  { %954 = dma.done.wait [#allocation3], 1024  }
  0x10   :  { %955 = vsyncadd [#allocation3], 4294966272 }
  0x11   :  { %956 = dma.done.wait [#allocation6], 192  }
  0x12   :  { %957 = vsyncadd [#allocation6], 4294967104 }
  0x13   :  { %958 = dma.done.wait [#allocation9], 4096  }
  0x14   :  { %959 = vsyncadd [#allocation9], 4294963200  ;;  %v81_v0 = vld [vmem:[#allocation2] sm:$0xff]  ;;  %v83_v1 = vld [vmem:[#allocation2 + $0x10] sm:$0xff]  ;;  %vm140_vm0 = vcmask 1043456   ;;  %vm259_vm1 = vcmask 1041408  }
  0x15   :  { %97 = vst [vmem:[#allocation1] ss:$2 sm:$0xff] %v81_v0  ;;  %v82_v2 = vld [vmem:[#allocation2 + $0x8] sm:$0xff]  ;;  %v84_v3 = vld [vmem:[#allocation2 + $0x18] sm:$0xff]  ;;  %v85_v4 = vld [vmem:[#allocation2 + $0x20] sm:$0xff]  ;;  %vm234_vm2 = vcmask 1041409  }
  0x16   :  { %105 = vst [vmem:[#allocation1 + $0x20] ss:$2 sm:$0xff] %v83_v1  ;;  %v87_v5 = vld [vmem:[#allocation2 + $0x30] sm:$0xff]  ;;  %v86_v10 = vld [vmem:[#allocation2 + $0x28] sm:$0xff]  ;;  %v88_v16 = vld [vmem:[#allocation2 + $0x38] sm:$0xff]  ;;  %vm236_vm3 = vcmask 1042434  }
  0x17   :  { %101 = vst [vmem:[#allocation1 + $0x10] ss:$2 sm:$0xff] %v82_v2  ;;  %v197_v48 = vld [vmem:[#allocation5] sm:$0xff]  ;;  %vm238_vm4 = vcmask 1043459   ;;  %vm240_vm5 = vcmask 1044484   ;;  %vm242_vm6 = vcmask 1045509  }
  0x18   :  { %109 = vst [vmem:[#allocation1 + $0x30] ss:$2 sm:$0xff] %v84_v3  ;;  %v799_v57 = vld [vmem:[#allocation8 + $0x38] sm:$0xff]  ;;  %v798_v62 = vld [vmem:[#allocation8 + $0x30] sm:$0xff]  ;;  %vm244_vm7 = vcmask 1046534   ;;  %vm246_vm8 = vcmask 1047559  }
  0x19   :  { %v807_v58 = vld [vmem:[#allocation8 + $0x78] sm:$0xff]  ;;  %v806_v63 = vld [vmem:[#allocation8 + $0x70] sm:$0xff]  ;;  %vm255_vm9 = vcmask 31744   ;;  %s970_s15 = smov [#allocation10]   ;;  %s648_s19 = sshll.u32 %s1040_s5, 4  ;;  %s649_s19 = int_to_ptr.hbm [resolvable:$true] %s648_s19 }
  0x1a   :  { %v815_v60 = vld [vmem:[#allocation8 + $0xb8] sm:$0xff]  ;;  %v814_v1 = vld [vmem:[#allocation8 + $0xb0] sm:$0xff]  ;;  %s646_s16 = sshll.u32 %s970_s15, 4  ;;  %s647_s16 = int_to_ptr.vmem [resolvable:$true] %s646_s16 }
  0x1b   :  { %v823_v61 = vld [vmem:[#allocation8 + $0xf8] sm:$0xff]  ;;  %v822_v2 = vld [vmem:[#allocation8 + $0xf0] sm:$0xff] }
  0x1c   :  { %v98_v6 = vld.sshfl [vmem:[#allocation1] sm:$0xff pattern:$0x75316420]  ;;  %v99_v7 = vld.sshfl [vmem:[#allocation1 + $0x8] sm:$0xff pattern:$0x75316420] }
  0x1d   :  { %v141_v8 = vsel %vm140_vm0, %v98_v6, 0.0  ;;  %v142_v9 = vsel %vm140_vm0, %v99_v7, 0.0  ;;  %112 = vst [vmem:[#allocation1] ss:$2 sm:$0xff] %v85_v4  ;;  %v805_v6 = vld [vmem:[#allocation8 + $0x68] sm:$0xff] }
  0x1e   :  { %v143_v11 = vadd.f32 %v142_v9, %v141_v8  ;;  %v106_v12 = vld.sshfl [vmem:[#allocation1 + $0x20] sm:$0xff pattern:$0x75316420]  ;;  %v107_v13 = vld.sshfl [vmem:[#allocation1 + $0x28] sm:$0xff pattern:$0x75316420]  ;;  %v224_v9 = vlaneseq }
  0x1f   :  { %v151_v14 = vsel %vm140_vm0, %v106_v12, 0.0  ;;  %v152_v15 = vsel %vm140_vm0, %v107_v13, 0.0  ;;  %118 = vst [vmem:[#allocation1 + $0x20] ss:$2 sm:$0xff] %v87_v5  ;;  %v797_v5 = vld [vmem:[#allocation8 + $0x28] sm:$0xff] }
  0x20   :  { %144 = vadd.xlane.f32.xlu0 %v143_v11  ;;  %v153_v17 = vadd.f32 %v152_v15, %v151_v14  ;;  %v102_v18 = vld.sshfl [vmem:[#allocation1 + $0x10] sm:$0xff pattern:$0x75316420]  ;;  %v103_v19 = vld.sshfl [vmem:[#allocation1 + $0x18] sm:$0xff pattern:$0x75316420] }
  0x21   :  { %115 = vst [vmem:[#allocation1 + $0x10] ss:$2 sm:$0xff] %v86_v10  ;;  %v146_v20 = vsel %vm140_vm0, %v102_v18, 0.0  ;;  %v147_v21 = vsel %vm140_vm0, %v103_v19, 0.0  ;;  %v813_v7 = vld [vmem:[#allocation8 + $0xa8] sm:$0xff]  ;;  %v796_v15 = vld [vmem:[#allocation8 + $0x20] sm:$0xff] }
  0x22   :  { %154 = vadd.xlane.f32.xlu1 %v153_v17  ;;  %v110_v22 = vld.sshfl [vmem:[#allocation1 + $0x30] sm:$0xff pattern:$0x75316420]  ;;  %v111_v23 = vld.sshfl [vmem:[#allocation1 + $0x38] sm:$0xff pattern:$0x75316420]  ;;  %v148_v26 = vadd.f32 %v147_v21, %v146_v20 }
  0x23   :  { %121 = vst [vmem:[#allocation1 + $0x30] ss:$2 sm:$0xff] %v88_v16  ;;  %v156_v24 = vsel %vm140_vm0, %v110_v22, 0.0  ;;  %v157_v25 = vsel %vm140_vm0, %v111_v23, 0.0  ;;  %v821_v8 = vld [vmem:[#allocation8 + $0xe8] sm:$0xff]  ;;  %v804_v16 = vld [vmem:[#allocation8 + $0x60] sm:$0xff] }
  0x24   :  { %v113_v27 = vld.sshfl [vmem:[#allocation1] sm:$0xff pattern:$0x75316420]  ;;  %v114_v28 = vld.sshfl [vmem:[#allocation1 + $0x8] sm:$0xff pattern:$0x75316420]  ;;  %v158_v32 = vadd.f32 %v157_v25, %v156_v24 }
  0x25   :  { %v161_v29 = vsel %vm140_vm0, %v113_v27, 0.0  ;;  %v162_v30 = vsel %vm140_vm0, %v114_v28, 0.0  ;;  %v812_v19 = vld [vmem:[#allocation8 + $0xa0] sm:$0xff]  ;;  %v225_v21 = vand.u32 127, %v224_v9  ;;  %v795_v28 = vld [vmem:[#allocation8 + $0x18] sm:$0xff] }
  0x26   :  { %v163_v31 = vadd.f32 %v162_v30, %v161_v29  ;;  %v119_v33 = vld.sshfl [vmem:[#allocation1 + $0x20] sm:$0xff pattern:$0x75316420]  ;;  %v120_v34 = vld.sshfl [vmem:[#allocation1 + $0x28] sm:$0xff pattern:$0x75316420] }
  0x27   :  { %v171_v39 = vsel %vm140_vm0, %v119_v33, 0.0  ;;  %v172_v40 = vsel %vm140_vm0, %v120_v34, 0.0  ;;  %v820_v20 = vld [vmem:[#allocation8 + $0xe0] sm:$0xff]  ;;  %v803_v29 = vld [vmem:[#allocation8 + $0x58] sm:$0xff] }
  0x28   :  { %149 = vadd.xlane.f32.xlu0 %v148_v26  ;;  %164 = vadd.xlane.f32.xlu2 %v163_v31  ;;  %v116_v35 = vld.sshfl [vmem:[#allocation1 + $0x10] sm:$0xff pattern:$0x75316420]  ;;  %v117_v36 = vld.sshfl [vmem:[#allocation1 + $0x18] sm:$0xff pattern:$0x75316420]  ;;  %v173_v46 = vadd.f32 %v172_v40, %v171_v39 }
  0x29   :  { %v166_v37 = vsel %vm140_vm0, %v116_v35, 0.0  ;;  %v167_v38 = vsel %vm140_vm0, %v117_v36, 0.0  ;;  %250 = vst [vmem:[#allocation1] ss:$4 sm:$0xff] %v197_v48  ;;  %v811_v31 = vld [vmem:[#allocation8 + $0x98] sm:$0xff]  ;;  %v808_v9 = vld [vmem:[#allocation8 + $0x80] sm:$0xff] }
  0x2a   :  { %159 = vadd.xlane.f32.xlu1 %v158_v32  ;;  %v122_v41 = vld.sshfl [vmem:[#allocation1 + $0x30] sm:$0xff pattern:$0x75316420]  ;;  %v123_v42 = vld.sshfl [vmem:[#allocation1 + $0x38] sm:$0xff pattern:$0x75316420]  ;;  %v168_v45 = vadd.f32 %v167_v38, %v166_v37 }
  0x2b   :  { %v176_v43 = vsel %vm140_vm0, %v122_v41, 0.0  ;;  %v177_v44 = vsel %vm140_vm0, %v123_v42, 0.0  ;;  %v819_v32 = vld [vmem:[#allocation8 + $0xd8] sm:$0xff] }
  0x2c   :  { %v178_v47 = vadd.f32 %v177_v44, %v176_v43  ;;  %v794_v43 = vld [vmem:[#allocation8 + $0x10] sm:$0xff] }
  0x2d   :  { %v802_v44 = vld [vmem:[#allocation8 + $0x50] sm:$0xff] }
  0x30   :  { %169 = vadd.xlane.f32.xlu2 %v168_v45  ;;  %174 = vadd.xlane.f32.xlu0 %v173_v46  ;;  %v251_v49 = vld.sshfl [vmem:[#allocation1] sm:$0xff pattern:$0x73625140]  ;;  %v252_v51 = vld.sshfl [vmem:[#allocation1 + $0x8] sm:$0xff pattern:$0x73625140] }
  0x31   :  { %v260_v50 = vsel %vm259_vm1, %v251_v49, 0  ;;  %v262_v52 = vsel %vm259_vm1, %v252_v51, 0  ;;  %v253_v53 = vld.sshfl [vmem:[#allocation1 + $0x10] sm:$0xff pattern:$0x73625140] }
  0x32   :  { %179 = vadd.xlane.f32.xlu1 %v178_v47  ;;  %275 = vmatpush.bf16.msra.mxu0 %v260_v50  ;;  %v264_v54 = vsel %vm259_vm1, %v253_v53, 0  ;;  %v254_v55 = vld.sshfl [vmem:[#allocation1 + $0x18] sm:$0xff pattern:$0x73625140] }
  0x33   :  { %288 = vmatpush.bf16.msra.mxu1 %v262_v52  ;;  %301 = vmatpush.bf16.msra.mxu2 %v264_v54  ;;  %v266_v56 = vsel %vm259_vm1, %v254_v55, 0 }
  0x34   :  { %314 = vmatpush.bf16.msra.mxu3 %v266_v56 }
  0x36   :  { %588 = vmatpush.bf16.msrb.mxu0 %v799_v57 }
  0x37   :  { %601 = vmatpush.bf16.msrb.mxu1 %v807_v58  ;;  %614 = vmatpush.bf16.msrb.mxu2 %v815_v60 }
  0x38   :  { %627 = vmatpush.bf16.msrb.mxu3 %v823_v61 }
  0x3a   :  { %589 = vmatpush.bf16.msrb.mxu0 %v798_v62 }
  0x3b   :  { %602 = vmatpush.bf16.msrb.mxu1 %v806_v63  ;;  %615 = vmatpush.bf16.msrb.mxu2 %v814_v1  ;;  %v793_v1 = vld [vmem:[#allocation8 + $0x8] sm:$0xff] }
  0x3c   :  { %628 = vmatpush.bf16.msrb.mxu3 %v822_v2  ;;  %v801_v2 = vld [vmem:[#allocation8 + $0x48] sm:$0xff] }
  0x3e   :  { %590 = vmatpush.bf16.msrb.mxu0 %v797_v5  ;;  %v792_v5 = vld [vmem:[#allocation8] sm:$0xff] }
  0x3f   :  { %603 = vmatpush.bf16.msrb.mxu1 %v805_v6  ;;  %616 = vmatpush.bf16.msrb.mxu2 %v813_v7  ;;  %v800_v6 = vld [vmem:[#allocation8 + $0x40] sm:$0xff]  ;;  %v809_v7 = vld [vmem:[#allocation8 + $0x88] sm:$0xff] }
  0x40   :  { %629 = vmatpush.bf16.msrb.mxu3 %v821_v8  ;;  %v817_v8 = vld [vmem:[#allocation8 + $0xc8] sm:$0xff] }
  0x42   :  { %591 = vmatpush.bf16.msrb.mxu0 %v796_v15 }
  0x43   :  { %604 = vmatpush.bf16.msrb.mxu1 %v804_v16  ;;  %617 = vmatpush.bf16.msrb.mxu2 %v812_v19 }
  0x44   :  { %630 = vmatpush.bf16.msrb.mxu3 %v820_v20 }
  0x46   :  { %592 = vmatpush.bf16.msrb.mxu0 %v795_v28 }
  0x47   :  { %605 = vmatpush.bf16.msrb.mxu1 %v803_v29  ;;  %618 = vmatpush.bf16.msrb.mxu2 %v811_v31 }
  0x48   :  { %631 = vmatpush.bf16.msrb.mxu3 %v819_v32 }
  0x4a   :  { %593 = vmatpush.bf16.msrb.mxu0 %v794_v43 }
  0x4b   :  { %606 = vmatpush.bf16.msrb.mxu1 %v802_v44 }
  0x4e   :  { %594 = vmatpush.bf16.msrb.mxu0 %v793_v1 }
  0x4f   :  { %607 = vmatpush.bf16.msrb.mxu1 %v801_v2 }
  0x52   :  { %595 = vmatpush.bf16.msrb.mxu0 %v792_v5 }
  0x53   :  { %608 = vmatpush.bf16.msrb.mxu1 %v800_v6 }
  0x93   :  { %v145_v59 = vpop.xlane.xlu0 %144 }
  0x94   :  { %v181_v3 = vmul.f32 0.00390625, %v145_v59 }
  0x95   :  { %v155_v0 = vpop.xlane.xlu1 %154 }
  0x96   :  { %v183_v4 = vmul.f32 0.00390625, %v155_v0  ;;  %v189_v10 = vpack.c.bf16 %v181_v3, %v181_v3  ;;  %v810_v3 = vld [vmem:[#allocation8 + $0x90] sm:$0xff] }
  0x97   :  { %619 = vmatpush.bf16.msrb.mxu2 %v810_v3 }
  0x98   :  { %v191_v11 = vpack.c.bf16 %v183_v4, %v183_v4  ;;  %v216_v22 = vunpack.c.l.b16 %v189_v10  ;;  %v818_v4 = vld [vmem:[#allocation8 + $0xd0] sm:$0xff]  ;;  %v816_v10 = vld [vmem:[#allocation8 + $0xc0] sm:$0xff] }
  0x99   :  { %632 = vmatpush.bf16.msrb.mxu3 %v818_v4 }
  0x9a   :  { %v218_v25 = vunpack.c.l.b16 %v191_v11  ;;  %v226_v33 = vperm.slane %v216_v22, %v225_v21  ;;  %v198_v11 = vld [vmem:[#allocation7] sm:$0xf] }
  0x9b   :  { %v150_v12 = vpop.xlane.xlu0 %149  ;;  %v165_v13 = vpop.xlane.xlu2 %164  ;;  %620 = vmatpush.bf16.msrb.mxu2 %v809_v7  ;;  %v202_v20 = vperm.slane %v198_v11, 2 }
  0x9c   :  { %v182_v14 = vmul.f32 0.00390625, %v150_v12  ;;  %v185_v17 = vmul.f32 0.00390625, %v165_v13  ;;  %v228_v36 = vperm.slane %v218_v25, %v225_v21  ;;  %v200_v12 = vperm.slane %v198_v11, 0 }
  0x9d   :  { %v160_v18 = vpop.xlane.xlu1 %159  ;;  %633 = vmatpush.bf16.msrb.mxu3 %v817_v8  ;;  %v201_v13 = vperm.slane %v198_v11, 1 }
  0x9e   :  { %v190_v23 = vpack.c.bf16 %v182_v14, %v182_v14  ;;  %v184_v24 = vmul.f32 0.00390625, %v160_v18  ;;  %v193_v30 = vpack.c.bf16 %v185_v17, %v185_v17 }
  0x9f   :  { %621 = vmatpush.bf16.msrb.mxu2 %v808_v9 }
  0xa0   :  { %v217_v26 = vunpack.c.l.b16 %v190_v23  ;;  %v192_v27 = vpack.c.bf16 %v184_v24, %v184_v24  ;;  %v220_v45 = vunpack.c.l.b16 %v193_v30 }
  0xa1   :  { %634 = vmatpush.bf16.msrb.mxu3 %v816_v10 }
  0xa2   :  { %v227_v34 = vperm.slane %v217_v26, %v225_v21  ;;  %v219_v35 = vunpack.c.l.b16 %v192_v27  ;;  %v230_v55 = vperm.slane %v220_v45, %v225_v21 }
  0xa3   :  { %v170_v37 = vpop.xlane.xlu2 %169  ;;  %v175_v38 = vpop.xlane.xlu0 %174 }
  0xa4   :  { %v235_v39 = vsel %vm234_vm2, %v227_v34, %v226_v33  ;;  %v229_v40 = vperm.slane %v219_v35, %v225_v21  ;;  %v186_v41 = vmul.f32 0.00390625, %v170_v37  ;;  %v187_v42 = vmul.f32 0.00390625, %v175_v38  ;;  %v833_v38 = vld [vmem:[%s1039_s4] ss:$0 sm:$0xff] }
  0xa5   :  { %v237_v46 = vsel %vm236_vm3, %v228_v36, %v235_v39  ;;  %v180_v47 = vpop.xlane.xlu1 %179 }
  0xa6   :  { %v194_v48 = vpack.c.bf16 %v186_v41, %v186_v41  ;;  %v195_v49 = vpack.c.bf16 %v187_v42, %v187_v42  ;;  %v188_v50 = vmul.f32 0.00390625, %v180_v47  ;;  %v239_v51 = vsel %vm238_vm4, %v229_v40, %v237_v46 }
  0xa7   :  { %v241_v59 = vsel %vm240_vm5, %v230_v55, %v239_v51 }
  0xa8   :  { %v221_v52 = vunpack.c.l.b16 %v194_v48  ;;  %v222_v53 = vunpack.c.l.b16 %v195_v49  ;;  %v196_v54 = vpack.c.bf16 %v188_v50, %v188_v50 }
  0xaa   :  { %v231_v56 = vperm.slane %v221_v52, %v225_v21  ;;  %v232_v57 = vperm.slane %v222_v53, %v225_v21  ;;  %v223_v58 = vunpack.c.l.b16 %v196_v54 }
  0xac   :  { %v243_v60 = vsel %vm242_vm6, %v231_v56, %v241_v59  ;;  %v233_v61 = vperm.slane %v223_v58, %v225_v21  ;;  %v203_v21 = vperm.slane %v198_v11, 3 }
  0xad   :  { %v245_v62 = vsel %vm244_vm7, %v232_v57, %v243_v60 }
  0xae   :  { %v247_v63 = vsel %vm246_vm8, %v233_v61, %v245_v62 }
  0xaf   :  { %v248_v0 = vpack.c.b16 %v247_v63, %v247_v63 }
  0xb1   :  { %660 = vmatmul.msk.bf16.vlgmr.msra.gmra.mxu0 %vm255_vm9, %v248_v0  ;;  %661 = vmatmul.msk.bf16.vlgmr.msra.gmra.mxu1 %vm255_vm9, %v248_v0 }
  0xb2   :  { %662 = vmatmul.msk.bf16.vlgmr.msra.gmra.mxu2 %vm255_vm9, %v248_v0  ;;  %663 = vmatmul.msk.bf16.vlgmr.msra.gmra.mxu3 %vm255_vm9, %v248_v0 }
 0x12e   :  { %v277_v14 = vpop.f32.mrf.mxu0  ;;  %v290_v15 = vpop.f32.mrf.mxu1 }
 0x12f   :  { %v278_v16 = vadd.f32 %v277_v14, %v200_v12  ;;  %v291_v17 = vadd.f32 %v290_v15, %v201_v13 }
 0x131   :  { %v320_v18 = vmax.f32 %v278_v16, 0.0  ;;  %v321_v19 = vmax.f32 %v291_v17, 0.0 }
 0x133   :  { %v324_v22 = vpack.c.bf16 %v320_v18, %v320_v18  ;;  %v325_v23 = vpack.c.bf16 %v321_v19, %v321_v19 }
 0x135   :  { %v303_v24 = vpop.f32.mrf.mxu2  ;;  %v316_v25 = vpop.f32.mrf.mxu3  ;;  %596 = vmatmul.bf16.vlgmr.msrb.gmra.mxu0 %v324_v22  ;;  %609 = vmatmul.bf16.vlgmr.msrb.gmra.mxu1 %v325_v23 }
 0x136   :  { %v304_v26 = vadd.f32 %v303_v24, %v202_v20  ;;  %v317_v27 = vadd.f32 %v316_v25, %v203_v21  ;;  %v279_v28 = vpop.f32.mrf.mxu0  ;;  %v292_v29 = vpop.f32.mrf.mxu1 }
 0x138   :  { %v322_v30 = vmax.f32 %v304_v26, 0.0  ;;  %v323_v31 = vmax.f32 %v317_v27, 0.0 }
 0x13a   :  { %v326_v32 = vpack.c.bf16 %v322_v30, %v322_v30  ;;  %v327_v33 = vpack.c.bf16 %v323_v31, %v323_v31 }
 0x13c   :  { %622 = vmatmul.bf16.vlgmr.msrb.gmra.mxu2 %v326_v32  ;;  %635 = vmatmul.bf16.vlgmr.msrb.gmra.mxu3 %v327_v33 }
 0x13d   :  { %v305_v34 = vpop.f32.mrf.mxu2  ;;  %v318_v35 = vpop.f32.mrf.mxu3 }
 0x1b2   :  { %v597_v36 = vpop.f32.mrf.mxu0  ;;  %v610_v37 = vpop.f32.mrf.mxu1 }
 0x1b3   :  { %v598_v39 = vadd.f32 %v833_v38, %v597_v36 }
 0x1b5   :  { %v611_v42 = vadd.f32 %v610_v37, %v598_v39 }
 0x1ba   :  { %v599_v40 = vpop.f32.mrf.mxu0  ;;  %v612_v41 = vpop.f32.mrf.mxu1 }
 0x1bf   :  { %v623_v43 = vpop.f32.mrf.mxu2  ;;  %v636_v44 = vpop.f32.mrf.mxu3 }
 0x1c0   :  { %v624_v45 = vadd.f32 %v623_v43, %v611_v42 }
 0x1c2   :  { %v637_v46 = vadd.f32 %v636_v44, %v624_v45 }
 0x1c4   :  { %640 = vst [vmem:[#allocation10] sm:$0xff] %v637_v46 }
 0x1c5   :  { %651 = dma.vmem_to_hbm [thread:$0]  %s647_s16, 128, %s649_s19, [#allocation4]  }
 0x1c7   :  { %v625_v47 = vpop.f32.mrf.mxu2  ;;  %v638_v48 = vpop.f32.mrf.mxu3 }
 0x1c8   :  { %960 = dma.done.wait [#allocation4], 128  }
 0x1c9   :  { %961 = vsyncadd [#allocation4], 4294967168 }
 0x1ca   :  { %656 = vsyncpa [#allocation3], 1 }
 0x1cb   :  { %657 = vsyncpa [#allocation6], 1 }
 0x1cc   :  { %658 = vsyncpa [#allocation9], 1 }
 0x1cd   :  { %659 = vsyncpa [#allocation4], 1 }

</bundles_post_ra>
